<compile_context>
chip_gen: v7x
topology: tpu7x:2x2x1
jax: 0.10.0
libtpu: 0.0.40
codegen_flags: <defaults>
</compile_context>

<pallas_src>
import functools

import jax
import jax.numpy as jnp
from jax import lax
from jax.experimental import pallas as pl
from jax.experimental.pallas import tpu as pltpu


def _discriminator_kernel(x_ref, w1_ref, b1_ref, w2_ref, b2_ref, o_ref):
    # x_ref : (TILE_B, D_in) f32   -- natural layout; bf16 cast happens here (VPU)
    # w1_ref: (H, D_in)      bf16  -- resident in VMEM across the whole grid
    # b1_ref: (H, 1)         f32
    # w2_ref: (H, D_out)     f32
    # b2_ref: (D_out, 1)     f32
    # o_ref : (D_out, TILE_B) f32  -- lane-dense output block (batch on the lane axis)
    x_b = x_ref[...].astype(jnp.bfloat16)

    # Layer 1 on the MXU: h[h, b] = sum_d w1[h, d] * x[b, d]  ->  (H, TILE_B), lane-dense.
    h = lax.dot_general(w1_ref[...], x_b, (((1,), (1,)), ((), ())),
                        preferred_element_type=jnp.float32)
    h = h + b1_ref[...]                      # (H, 1) bias broadcasts over lanes
    h = jnp.maximum(h, 0.1 * h)              # LeakyReLU(0.1): mul + max (2 VALU ops)

    if o_ref.shape[0] == 1:
        # D_out == 1 (GAN discriminator head): VPU multiply + sublane (XLU) reduction.
        # Avoids an N=1 MXU matmul that would use 1/128 of the output lanes.
        z = jnp.sum(h * w2_ref[...], axis=0, keepdims=True)          # (1, TILE_B)
    else:
        # Generic head (not hot for D_out=1); keeps (D_out, TILE_B) lane-dense.
        z = lax.dot_general(w2_ref[...], h, (((0,), (0,)), ((), ())),
                            preferred_element_type=jnp.float32)      # (D_out, TILE_B)

    z = z + b2_ref[...]                      # (D_out, 1) bias broadcast over lanes
    # Exact sigmoid with a single EUP op: sigmoid(z) = 0.5 * (tanh(z/2) + 1).
    o_ref[...] = (0.5 * (jnp.tanh(0.5 * z) + 1.0)).astype(o_ref.dtype)


def _pick_batch_tile(B, tile_b):
    """Pick the batch tile: lane-axis multiple of 128, >=2 grid steps once B is large
    (so v7x's 2 TensorCores both get work), and preferably an exact divisor of B
    (no ragged last tile, no padded copy of x)."""
    if B <= 256 or (B <= tile_b and B % 128 != 0):
        return B                                        # single full block (always legal)
    cap = min(tile_b, max(((B // 2) // 128) * 128, 128))
    for cand in range(cap, 127, -128):                  # largest /128 tile dividing B
        if B % cand == 0:
            return cand
    return cap        # no such divisor: ragged last tile, Pallas masks the OOB writes


@functools.partial(jax.jit, static_argnames=("tile_b",))
def discriminator_forward(x, w1, b1, w2, b2, *, tile_b=8192):
    """Forward pass of the Discrimintaor module.

    x : (B, D_in) f32        (same convention as the PyTorch module input)
    w1: (H, D_in) f32        (PyTorch nn.Linear weight layout: (out_features, in_features))
    b1: (H,)      f32
    w2: (D_out, H) f32
    b2: (D_out,)  f32
    returns (B, D_out) f32
    """
    B, D_in = x.shape
    H = w1.shape[0]
    D_out = w2.shape[0]

    tb = _pick_batch_tile(B, tile_b)
    grid = (pl.cdiv(B, tb),)

    # Tiny one-time parameter plumbing; weights stay resident in VMEM across the grid.
    x_f = x.astype(jnp.float32)                       # x read once, f32, no transpose pass
    w1_b = w1.astype(jnp.bfloat16)                    # (H, D_in)
    b1_c = b1.reshape(H, 1).astype(jnp.float32)       # (H, 1)
    w2_k = w2.T.astype(jnp.float32)                   # (H, D_out)
    b2_c = b2.reshape(D_out, 1).astype(jnp.float32)   # (D_out, 1)

    cost = pl.CostEstimate(
        flops=2 * B * D_in * H + 2 * B * H * D_out,
        transcendentals=B * D_out,
        bytes_accessed=B * D_in * 4 + B * D_out * 4 + H * D_in * 2 + H * 4 + H * D_out * 4 + D_out * 4,
    )

    out_t = pl.pallas_call(
        _discriminator_kernel,
        out_shape=jax.ShapeDtypeStruct((D_out, B), jnp.float32),
        grid_spec=pltpu.PrefetchScalarGridSpec(
            num_scalar_prefetch=0,
            grid=grid,
            in_specs=[
                pl.BlockSpec((tb, D_in), lambda i: (i, 0)),   # x tile, pipelined over batch
                pl.BlockSpec((H, D_in), lambda i: (0, 0)),    # weights: same block every step
                pl.BlockSpec((H, 1), lambda i: (0, 0)),
                pl.BlockSpec((H, D_out), lambda i: (0, 0)),
                pl.BlockSpec((D_out, 1), lambda i: (0, 0)),
            ],
            out_specs=pl.BlockSpec((D_out, tb), lambda i: (0, i)),
        ),
        compiler_params=pltpu.CompilerParams(
            dimension_semantics=("parallel",),   # independent batch tiles (v7x: 2 TCs)
        ),
        cost_estimate=cost,
    )(x_f, w1_b, b1_c, w2_k, b2_c)

    # Back to the PyTorch (B, D_out) convention (for D_out == 1 this is just a reshape).
    return out_t.T


def init_params(key, input_shape, hidden_units, output_shape):
    # Deterministic init mimicking nn.Linear's U(-1/sqrt(fan_in), 1/sqrt(fan_in)),
    # stored in PyTorch-native layouts.
    k1, k2, k3, k4 = jax.random.split(key, 4)
    lim1 = 1.0 / jnp.sqrt(float(input_shape))
    lim2 = 1.0 / jnp.sqrt(float(hidden_units))
    w1 = jax.random.uniform(k1, (hidden_units, input_shape), jnp.float32, -lim1, lim1)
    b1 = jax.random.uniform(k2, (hidden_units,), jnp.float32, -lim1, lim1)
    w2 = jax.random.uniform(k3, (output_shape, hidden_units), jnp.float32, -lim2, lim2)
    b2 = jax.random.uniform(k4, (output_shape,), jnp.float32, -lim2, lim2)
    return w1, b1, w2, b2


def reference_forward(x, w1, b1, w2, b2):
    h = x @ w1.T + b1
    h = jnp.where(h >= 0, h, 0.1 * h)
    z = h @ w2.T + b2
    return jax.nn.sigmoid(z)


if __name__ == "__main__":
    # Discrimintaor(input_shape=64, hidden_units=32, output_shape=1)
    input_shape, hidden_units, output_shape = 64, 32, 1

    key = jax.random.PRNGKey(0)
    kx, kp, kx2 = jax.random.split(key, 3)
    w1, b1, w2, b2 = init_params(kp, input_shape, hidden_units, output_shape)

    # Toy batch: single full-block path.
    x_small = jax.random.normal(kx, (8, input_shape), jnp.float32)
    out_small = jax.block_until_ready(discriminator_forward(x_small, w1, b1, w2, b2))
    ref_small = reference_forward(x_small, w1, b1, w2, b2)
    assert out_small.shape == (8, output_shape)
    assert jnp.allclose(out_small, ref_small, atol=1e-2, rtol=1e-2)

    # Modest batch: exercises the tiled (2-step, "parallel") grid path.
    x_big = jax.random.normal(kx2, (512, input_shape), jnp.float32)
    out_big = jax.block_until_ready(discriminator_forward(x_big, w1, b1, w2, b2))
    ref_big = reference_forward(x_big, w1, b1, w2, b2)
    assert out_big.shape == (512, output_shape)
    assert jnp.allclose(out_big, ref_big, atol=1e-2, rtol=1e-2)

    print("KERNEL_OK")
</pallas_src>

<mosaic_0001>
module attributes {stable_mosaic.version = 11 : i64} {
  func.func @_discriminator_kernel(%arg0: i32, %arg1: memref<8x64xf32, #tpu.memory_space<vmem>>, %arg2: memref<32x64xbf16, #tpu.memory_space<vmem>>, %arg3: memref<32x1xf32, #tpu.memory_space<vmem>>, %arg4: memref<32x1xf32, #tpu.memory_space<vmem>>, %arg5: memref<1x1xf32, #tpu.memory_space<vmem>>, %arg6: memref<1x8xf32, #tpu.memory_space<vmem>>) attributes {dimension_semantics = [#tpu.dimension_semantics<parallel>], iteration_bounds = array<i64: 1>, scalar_prefetch = 0 : i64, scratch_operands = 0 : i64, tpu.core_type = #tpu.core_type<tc>, window_params = [{transform_indices = @transform_0, window_bounds = array<i64: 8, 64>}, {pipeline_mode = #tpu.pipeline_mode<synchronous>, transform_indices = @transform_1, window_bounds = array<i64: 32, 64>}, {pipeline_mode = #tpu.pipeline_mode<synchronous>, transform_indices = @transform_2, window_bounds = array<i64: 32, 1>}, {pipeline_mode = #tpu.pipeline_mode<synchronous>, transform_indices = @transform_3, window_bounds = array<i64: 32, 1>}, {pipeline_mode = #tpu.pipeline_mode<synchronous>, transform_indices = @transform_4, window_bounds = array<i64: 1, 1>}, {transform_indices = @transform_5, window_bounds = array<i64: 1, 8>}]} {
    %c0 = arith.constant 0 : index
    %c0_0 = arith.constant 0 : index
    %0 = vector.load %arg1[%c0, %c0_0] : memref<8x64xf32, #tpu.memory_space<vmem>>, vector<8x64xf32>
    %1 = arith.truncf %0 : vector<8x64xf32> to vector<8x64xbf16>
    %c0_1 = arith.constant 0 : index
    %c0_2 = arith.constant 0 : index
    %2 = vector.load %arg2[%c0_1, %c0_2] : memref<32x64xbf16, #tpu.memory_space<vmem>>, vector<32x64xbf16>
    %cst = arith.constant dense<0.000000e+00> : vector<32x8xf32>
    %3 = tpu.matmul %2, %1, %cst {dimension_numbers = #tpu.dot_dimension_numbers<[1], [1], [0], [0], [0, 0, 1, 0], [], []>} : vector<32x64xbf16>, vector<8x64xbf16>, vector<32x8xf32> -> vector<32x8xf32>
    %c0_3 = arith.constant 0 : index
    %c0_4 = arith.constant 0 : index
    %4 = vector.load %arg3[%c0_3, %c0_4] : memref<32x1xf32, #tpu.memory_space<vmem>>, vector<32x1xf32>
    %5 = vector.broadcast %4 : vector<32x1xf32> to vector<32x8xf32>
    %6 = arith.addf %3, %5 : vector<32x8xf32>
    %cst_5 = arith.constant 1.000000e-01 : f32
    %7 = vector.broadcast %cst_5 : f32 to vector<32x8xf32>
    %8 = arith.mulf %7, %6 : vector<32x8xf32>
    %9 = arith.maximumf %6, %8 : vector<32x8xf32>
    %c0_6 = arith.constant 0 : index
    %c0_7 = arith.constant 0 : index
    %10 = vector.load %arg4[%c0_6, %c0_7] : memref<32x1xf32, #tpu.memory_space<vmem>>, vector<32x1xf32>
    %11 = vector.broadcast %10 : vector<32x1xf32> to vector<32x8xf32>
    %12 = arith.mulf %9, %11 : vector<32x8xf32>
    %cst_8 = arith.constant dense<0.000000e+00> : vector<8xf32>
    %13 = vector.multi_reduction <add>, %12, %cst_8 [0] : vector<32x8xf32> to vector<8xf32>
    %14 = vector.shape_cast %13 : vector<8xf32> to vector<1x8xf32>
    %c0_9 = arith.constant 0 : index
    %c0_10 = arith.constant 0 : index
    %15 = vector.load %arg5[%c0_9, %c0_10] : memref<1x1xf32, #tpu.memory_space<vmem>>, vector<1x1xf32>
    %16 = vector.broadcast %15 : vector<1x1xf32> to vector<1x8xf32>
    %17 = arith.addf %14, %16 : vector<1x8xf32>
    %cst_11 = arith.constant 5.000000e-01 : f32
    %18 = vector.broadcast %cst_11 : f32 to vector<1x8xf32>
    %19 = arith.mulf %18, %17 : vector<1x8xf32>
    %20 = math.tanh %19 : vector<1x8xf32>
    %cst_12 = arith.constant 1.000000e+00 : f32
    %21 = vector.broadcast %cst_12 : f32 to vector<1x8xf32>
    %22 = arith.addf %20, %21 : vector<1x8xf32>
    %cst_13 = arith.constant 5.000000e-01 : f32
    %23 = vector.broadcast %cst_13 : f32 to vector<1x8xf32>
    %24 = arith.mulf %23, %22 : vector<1x8xf32>
    %c0_14 = arith.constant 0 : index
    %c0_15 = arith.constant 0 : index
    %25 = vector.load %arg6[%c0_14, %c0_15] : memref<1x8xf32, #tpu.memory_space<vmem>>, vector<1x8xf32>
    tpu.vector_store %arg6[%c0_14, %c0_15], %24 {strides = array<i32>} : memref<1x8xf32, #tpu.memory_space<vmem>>, vector<1x8xf32>,
    return
  }
  func.func @transform_0(%arg0: i32) -> (i32, i32) {
    %c0_i32 = arith.constant 0 : i32
    %c0_i32_0 = arith.constant 0 : i32
    return %arg0, %c0_i32 : i32, i32
  }
  func.func @transform_1(%arg0: i32) -> (i32, i32) {
    %c0_i32 = arith.constant 0 : i32
    %c0_i32_0 = arith.constant 0 : i32
    %c0_i32_1 = arith.constant 0 : i32
    return %c0_i32, %c0_i32_0 : i32, i32
  }
  func.func @transform_2(%arg0: i32) -> (i32, i32) {
    %c0_i32 = arith.constant 0 : i32
    %c0_i32_0 = arith.constant 0 : i32
    %c0_i32_1 = arith.constant 0 : i32
    return %c0_i32, %c0_i32_0 : i32, i32
  }
  func.func @transform_3(%arg0: i32) -> (i32, i32) {
    %c0_i32 = arith.constant 0 : i32
    %c0_i32_0 = arith.constant 0 : i32
    %c0_i32_1 = arith.constant 0 : i32
    return %c0_i32, %c0_i32_0 : i32, i32
  }
  func.func @transform_4(%arg0: i32) -> (i32, i32) {
    %c0_i32 = arith.constant 0 : i32
    %c0_i32_0 = arith.constant 0 : i32
    %c0_i32_1 = arith.constant 0 : i32
    return %c0_i32, %c0_i32_0 : i32, i32
  }
  func.func @transform_5(%arg0: i32) -> (i32, i32) {
    %c0_i32 = arith.constant 0 : i32
    %c0_i32_0 = arith.constant 0 : i32
    return %c0_i32, %arg0 : i32, i32
  }
}

</mosaic_0001>

<bundles_post_ra>
// kernel: discriminator_forward.1
= control target key start
LH: loop header
LB: loop body
LE: loop exit
PB: predicated region body
PF: predicated region fallthrough
CT: control target
= control target key end

     0   :  { %s334_s0 = inlined_call_operand.vmem [shape: f32[8,64], index: 0, kind: input, shape index: {}]   ;;  %s335_s1 = inlined_call_operand.vmem [shape: bf16[32,64], index: 1, kind: input, shape index: {}]   ;;  %s336_s2 = inlined_call_operand.vmem [shape: f32[32,1], index: 2, kind: input, shape index: {}]   ;;  %s337_s3 = inlined_call_operand.vmem [shape: f32[32,1], index: 3, kind: input, shape index: {}]   ;;  %s338_s4 = inlined_call_operand.<no memory space> [shape: f32[1,1], index: 4, kind: input, shape index: {}]   ;;  %s339_s5 = inlined_call_operand.hbm [shape: f32[1,8], index: 5, kind: output, shape index: {}]  }
   0x1   :  { %v10_v0 = vstv %s338_s4 }
   0x2   :  { %11 = vst [vmem:[#allocation2] sm:$0x1] %v10_v0 }
   0x3   :  { %v24_v1 = vld [vmem:[%s334_s0] sm:$0xff]  ;;  %vm64_vm0 = vcmask 523264   ;;  %v250_v4 = vmov 0   ;;  %v32_v7 = vld [vmem:[%s336_s2 + $0x10] sm:$0xff]  ;;  %v31_v8 = vld [vmem:[%s336_s2 + $0x8] sm:$0xff] }
   0x4   :  { %v25_v2 = vpack.c.bf16 %v24_v1, %v24_v1  ;;  %v222_v3 = vld [vmem:[%s335_s1] sm:$0xff]   ;;  %220 = vset.pattern.permute.xlu0 %v250_v4  ;;  %221 = vset.pattern.permute.xlu1 %v250_v4 }
   0x5   :  { %v30_v5 = vld [vmem:[%s336_s2] sm:$0xff]  ;;  %213 = vmatprep.mubr.msk.bf16.mxu0 %vm64_vm0, %v222_v3  ;;  %46 = vperm.xlu1 %221, %v32_v7  }
   0x6   :  { %217 = vmatprep.subr.msk.bf16.mxu0 %vm64_vm0, %v25_v2  ;;  %v72_v6 = vsel %vm64_vm0, %v25_v2, 0  ;;  %36 = vperm.xlu0 %220, %v30_v5  }
   0x7   :  { %212 = vmatpush3.bf16.xpose.msra.mxu0 %v72_v6 }
   0x8   :  { %12 = vsyncpa [#allocation4], 0  ;;  %v33_v9 = vld [vmem:[%s336_s2 + $0x18] sm:$0xff]  ;;  %v223_v10 = vld [vmem:[%s335_s1 + $0x8] sm:$0xff]   ;;  %vm159_vm1 = vcmask 64512   ;;  %v179_v50 = vlaneseq  ;;  %vm188_vm2 = vcmask 57344  }
   0x9   :  { %v131_v11 = vld [vmem:[%s337_s3] sm:$0xff]  ;;  %51 = vperm.xlu1 %221, %v33_v9   ;;  %v132_v12 = vld [vmem:[%s337_s3 + $0x8] sm:$0xff]  ;;  %v133_v13 = vld [vmem:[%s337_s3 + $0x10] sm:$0xff] }
   0xa   :  { %41 = vperm.xlu0 %220, %v31_v8   ;;  %v134_v14 = vld [vmem:[%s337_s3 + $0x18] sm:$0xff]  ;;  %v173_v15 = vld [vmem:[#allocation2] sm:$0x1]  ;;  %v180_v53 = vshrl.u32 %v179_v50, 7  ;;  %s251_s3 = smov [#allocation3]  }
   0xb   :  { %s196_s13 = sshll.u32 %s251_s3, 4  ;;  %s197_s13 = int_to_ptr.vmem [resolvable:$true] %s196_s13 }
   0xc   :  { %v181_v56 = vsub.s32 0, %v180_v53  ;;  %s226_s14 = scalar_lea.vmem %s197_s13, 16  ;;  %s230_s15 = scalar_lea.vmem %s197_s13, 32 }
   0xd   :  { %142 = vperm.xlu1 %221, %v132_v12   ;;  %p227_p0 = scmp.ne.s32.totalorder %s197_s13, %s226_s14  ;;  %p231_p1 = scmp.lt.s32.totalorder %s197_s13, %s197_s13 }
   0xe   :  { %214 = vmatmul.mubr.msk.bf16.vlgmr.msra.gmra.mrb[0].mxu0 %vm64_vm0, %v223_v10  ;;  %137 = vperm.xlu0 %220, %v131_v11   ;;  %p232_p2 = scmp.lt.s32.totalorder %s230_s15, %s226_s14 }
  0x10   :  { %p233_p3 = por %p232_p2, %p231_p1 }
  0x11   :  { %152 = vperm.xlu1 %221, %v134_v14  }
  0x12   :  { %147 = vperm.xlu0 %220, %v133_v13   ;;  %p234_p4 = pnand %p233_p3, %p227_p0 }
  0x16   :  { %176 = vperm.xlu0 %220, %v173_v15  }
  0x84   :  { %v47_v17 = vpop.permute.xlu1 %46 }
  0x85   :  { %v37_v16 = vpop.permute.xlu0 %36 }
  0x88   :  { %v52_v19 = vpop.permute.xlu1 %51 }
  0x89   :  { %v42_v18 = vpop.permute.xlu0 %41 }
  0x8c   :  { %v143_v31 = vpop.permute.xlu1 %142 }
  0x8d   :  { %v138_v25 = vpop.permute.xlu0 %137 }
  0x90   :  { %v153_v42 = vpop.permute.xlu1 %152 }
  0x91   :  { %v148_v39 = vpop.permute.xlu0 %147 }
  0x95   :  { %v177_v58 = vpop.permute.xlu0 %176 }
  0x96   :  { %v182_v60 = vrot.slane %v177_v58, %v181_v56 }
  0xe1   :  { %v215_v20 = vpop.f32.mrb[0].mxu0 }
  0xe2   :  { %v117_v21 = vadd.f32 %v215_v20, %v47_v17  ;;  %v108_v22 = vpop.f32.mrb[1].mxu0 }
  0xe3   :  { %v109_v23 = vadd.f32 %v108_v22, %v37_v16  ;;  %v216_v24 = vpop.f32.mrb[2].mxu0 }
  0xe4   :  { %v125_v26 = vmul.f32 0.1, %v117_v21  ;;  %v120_v27 = vadd.f32 %v216_v24, %v52_v19  ;;  %v111_v28 = vpop.f32.mrb[3].mxu0 }
  0xe5   :  { %v123_v29 = vmul.f32 0.1, %v109_v23  ;;  %v112_v30 = vadd.f32 %v111_v28, %v42_v18 }
  0xe6   :  { %v126_v32 = vmul.f32 0.1, %v120_v27  ;;  %v129_v33 = vmax.f32 %v117_v21, %v125_v26 }
  0xe7   :  { %v127_v34 = vmax.f32 %v109_v23, %v123_v29  ;;  %v124_v35 = vmul.f32 0.1, %v112_v30 }
  0xe8   :  { %v130_v37 = vmax.f32 %v120_v27, %v126_v32  ;;  %v157_v40 = vmul.f32 %v148_v39, %v129_v33 }
  0xe9   :  { %v155_v36 = vmul.f32 %v138_v25, %v127_v34  ;;  %v128_v38 = vmax.f32 %v112_v30, %v124_v35 }
  0xea   :  { %v158_v44 = vmul.f32 %v153_v42, %v130_v37  ;;  %v163_v47 = vsel %vm159_vm1, %v157_v40, 0.0 }
  0xeb   :  { %v156_v41 = vmul.f32 %v143_v31, %v128_v38  ;;  %v160_v43 = vsel %vm159_vm1, %v155_v36, 0.0 }
  0xec   :  { %v165_v49 = vsel %vm159_vm1, %v158_v44, 0.0 }
  0xed   :  { %v161_v45 = vsel %vm159_vm1, %v156_v41, 0.0 }
  0xee   :  { %v162_v46 = vadd.f32 %v161_v45, %v160_v43 }
  0xf0   :  { %v164_v48 = vadd.f32 %v163_v47, %v162_v46 }
  0xf2   :  { %v166_v51 = vadd.f32 %v165_v49, %v164_v48 }
  0xf4   :  { %v167_v52 = vrot.slane %v166_v51, 4 }
  0xf6   :  { %v168_v54 = vadd.f32 %v167_v52, %v166_v51 }
  0xf8   :  { %v169_v55 = vrot.slane %v168_v54, 2 }
  0xfa   :  { %v170_v57 = vadd.f32 %v169_v55, %v168_v54 }
  0xfc   :  { %v171_v59 = vrot.slane %v170_v57, 1 }
  0xfe   :  { %v172_v61 = vadd.f32 %v171_v59, %v170_v57 }
 0x100   :  { %v183_v62 = vadd.f32 %v182_v60, %v172_v61 }
 0x102   :  { %v184_v63 = vmul.f32 0.5, %v183_v62 }
 0x104   :  { %224 = vtanh.f32 %v184_v63 }
 0x10e   :  { %v225_v0 = vpop.eup %224 }
 0x10f   :  { %v186_v1 = vadd.f32 1.0, %v225_v0 }
 0x111   :  { %v187_v2 = vmul.f32 0.5, %v186_v1 }
 0x113   :  { %189 = vst.msk [vmem:[#allocation3] sm:$0x1] %vm188_vm2, %v187_v2 }
 0x114   :  { %237 = shalt.err (!%p234_p4)
}
 0x115   :  { %s238_s18 = scalar_lea.hbm %s339_s5, 16 }
 0x116   :  { %p239_p5 = scmp.ne.s32.totalorder %s339_s5, %s238_s18  ;;  %p242_p6 = scmp.lt.u32.totalorder %s238_s18, %s339_s5 }
 0x118   :  { %p244_p7 = pnand %p242_p6, %p239_p5 }
 0x11a   :  { %247 = shalt.err (!%p244_p7)
}
 0x11b   :  { %199 = dma.vmem_to_hbm [thread:$0]  %s197_s13, 16, %s339_s5, [#allocation4]  }
 0x11c   :  { %248 = dma.done.wait [#allocation4], 16  }
 0x11d   :  { %249 = vsyncadd [#allocation4], 4294967280 }
 0x11e   :  { %203 = vsyncpa [#allocation4], 1 }

</bundles_post_ra>
